<compile_context>
chip_gen: v7x
topology: tpu7x:2x2x1
jax: 0.10.0
libtpu: 0.0.40
codegen_flags: <defaults>
</compile_context>

<pallas_src>
import jax
import jax.numpy as jnp
from jax.experimental import pallas as pl
from jax.experimental.pallas import tpu as pltpu


# dot_general dimension numbers:
#   (M,K) x (N,K) -> (M,N)  (contract last-with-last; avoids materializing a transpose)
_CONTRACT_LAST = (((1,), (1,)), ((), ()))
#   (M,K) x (K,N) -> (M,N)  (plain matmul)
_CONTRACT_MATMUL = (((1,), (0,)), ((), ()))


def _masked_softmax_pv(scores, valid_len, values):
    """softmax over the last axis of `scores` (positions >= valid_len masked),
    multiplied into `values`; the 1/denom scale is applied after the PV matmul."""
    rows, cols = scores.shape
    col_idx = jax.lax.broadcasted_iota(jnp.int32, (rows, cols), 1)
    masked = jnp.where(col_idx >= valid_len, jnp.float32(-1e30), scores)
    p = jnp.exp(masked - jnp.max(masked, axis=-1, keepdims=True))
    inv_denom = pl.reciprocal(jnp.sum(p, axis=-1, keepdims=True), approx=False)
    pv = jax.lax.dot_general(p.astype(values.dtype), values, _CONTRACT_MATMUL,
                             preferred_element_type=jnp.float32)
    return pv * inv_denom            # (rows, H) f32


def _store_enhancement(out_ref, x, x_tilde):
    """Write [x; x~; x - x~; x * x~] as four direct H-wide slice stores."""
    h = x.shape[-1]                  # static (padded to a multiple of 128)
    od = out_ref.dtype
    xf = x.astype(jnp.float32)
    out_ref[0, :, pl.ds(0 * h, h)] = x.astype(od)
    out_ref[0, :, pl.ds(1 * h, h)] = x_tilde.astype(od)
    out_ref[0, :, pl.ds(2 * h, h)] = (xf - x_tilde).astype(od)
    out_ref[0, :, pl.ds(3 * h, h)] = (xf * x_tilde).astype(od)


def _local_inference_kernel(len1_ref, len2_ref,      # scalar-prefetch (SMEM)
                            x1_ref, x2_ref,          # inputs  (1, Lp, Hp) VMEM
                            m1_ref, m2_ref):         # outputs (1, Lp, 4*Hp) VMEM
    b = pl.program_id(0)
    len1 = len1_ref[b]
    len2 = len2_ref[b]

    x1 = x1_ref[0]                   # (L1p, Hp), native dtype -> MXU native path
    x2 = x2_ref[0]                   # (L2p, Hp)

    # Both score orientations on the MXU (no XLU transpose of the score matrix).
    e12 = jax.lax.dot_general(x1, x2, _CONTRACT_LAST,
                              preferred_element_type=jnp.float32)   # (L1p, L2p)
    e21 = jax.lax.dot_general(x2, x1, _CONTRACT_LAST,
                              preferred_element_type=jnp.float32)   # (L2p, L1p)

    x1_tilde = _masked_softmax_pv(e12, len2, x2)     # (L1p, Hp) f32
    x2_tilde = _masked_softmax_pv(e21, len1, x1)     # (L2p, Hp) f32

    _store_enhancement(m1_ref, x1, x1_tilde)
    _store_enhancement(m2_ref, x2, x2_tilde)


def _round_up(x, m):
    return (x + m - 1) // m * m


def local_inference_modeling(x1_bar, seq_lengths1, x2_bar, seq_lengths2):
    """Pallas implementation of LocalInferenceModeling.forward."""
    B, L1, H = x1_bar.shape
    _, L2, _ = x2_bar.shape
    out_dtype = x1_bar.dtype
    itemsize = jnp.dtype(out_dtype).itemsize

    # Pad sequence dims to the sublane multiple and hidden to a lane multiple so
    # every store is lane-dense and every tile is (8,128)-friendly.  Padded rows
    # / columns are handled by the length masks and sliced off afterwards.
    sublane = 16 if out_dtype == jnp.bfloat16 else 8
    L1p = _round_up(L1, sublane)
    L2p = _round_up(L2, sublane)
    Hp = _round_up(H, 128)

    def _pad(x, Lp):
        pad_l = Lp - x.shape[1]
        pad_h = Hp - x.shape[2]
        if pad_l or pad_h:
            x = jnp.pad(x, ((0, 0), (0, pad_l), (0, pad_h)))
        return x

    x1p = _pad(x1_bar, L1p)
    x2p = _pad(x2_bar, L2p)

    grid_spec = pltpu.PrefetchScalarGridSpec(
        num_scalar_prefetch=2,
        grid=(B,),
        in_specs=[
            pl.BlockSpec((1, L1p, Hp), lambda b, len1_ref, len2_ref: (b, 0, 0)),
            pl.BlockSpec((1, L2p, Hp), lambda b, len1_ref, len2_ref: (b, 0, 0)),
        ],
        out_specs=[
            pl.BlockSpec((1, L1p, 4 * Hp), lambda b, len1_ref, len2_ref: (b, 0, 0)),
            pl.BlockSpec((1, L2p, 4 * Hp), lambda b, len1_ref, len2_ref: (b, 0, 0)),
        ],
    )

    # Explicit scoped-VMEM budget: double-buffered in/out blocks + score temps.
    in_bytes = (L1p * Hp + L2p * Hp) * itemsize
    out_bytes = 4 * Hp * (L1p + L2p) * itemsize
    score_bytes = 2 * L1p * L2p * 4
    need = 2 * (in_bytes + out_bytes) + 4 * score_bytes + (8 << 20)
    vmem_limit = int(min(max(need, 32 << 20), 96 << 20))

    m1p, m2p = pl.pallas_call(
        _local_inference_kernel,
        out_shape=(
            jax.ShapeDtypeStruct((B, L1p, 4 * Hp), out_dtype),
            jax.ShapeDtypeStruct((B, L2p, 4 * Hp), out_dtype),
        ),
        grid_spec=grid_spec,
        compiler_params=pltpu.CompilerParams(
            dimension_semantics=("parallel",),
            vmem_limit_bytes=vmem_limit),
    )(seq_lengths1.astype(jnp.int32), seq_lengths2.astype(jnp.int32), x1p, x2p)

    def _unpad(mp, L):
        m = mp
        if Hp != H:
            Lp = m.shape[1]
            m = m.reshape(B, Lp, 4, Hp)[..., :H].reshape(B, Lp, 4 * H)
        if m.shape[1] != L:
            m = m[:, :L]
        return m

    return _unpad(m1p, L1), _unpad(m2p, L2)


def _reference(x1_bar, seq_lengths1, x2_bar, seq_lengths2):
    """Pure-JAX reference mirroring the PyTorch module."""
    e = jnp.einsum("bik,bjk->bij", x1_bar, x2_bar)
    B, L1, L2 = e.shape
    mask1 = jnp.arange(L1)[None, :] >= seq_lengths1[:, None]   # (B, L1)
    mask2 = jnp.arange(L2)[None, :] >= seq_lengths2[:, None]   # (B, L2)

    e_m = jnp.where(mask2[:, None, :], -jnp.inf, e)
    s1 = jax.nn.softmax(e_m, axis=2)
    x1_tilde = jnp.einsum("bij,bjk->bik", s1, x2_bar)

    eT_m = jnp.where(mask1[:, None, :], -jnp.inf, jnp.swapaxes(e, 1, 2))
    s2 = jax.nn.softmax(eT_m, axis=2)
    x2_tilde = jnp.einsum("bji,bik->bjk", s2, x1_bar)

    m1 = jnp.concatenate(
        [x1_bar, x1_tilde, x1_bar - x1_tilde, x1_bar * x1_tilde], axis=-1)
    m2 = jnp.concatenate(
        [x2_bar, x2_tilde, x2_bar - x2_tilde, x2_bar * x2_tilde], axis=-1)
    return m1, m2


if __name__ == "__main__":
    B, L1, L2, H = 2, 8, 16, 32
    key = jax.random.PRNGKey(0)
    k1, k2 = jax.random.split(key)
    x1_bar = jax.random.normal(k1, (B, L1, H), dtype=jnp.float32)
    x2_bar = jax.random.normal(k2, (B, L2, H), dtype=jnp.float32)
    seq_lengths1 = jnp.array([L1, 5], dtype=jnp.int32)
    seq_lengths2 = jnp.array([11, L2], dtype=jnp.int32)

    m1, m2 = local_inference_modeling(x1_bar, seq_lengths1, x2_bar, seq_lengths2)
    jax.block_until_ready((m1, m2))

    r1, r2 = _reference(x1_bar, seq_lengths1, x2_bar, seq_lengths2)
    assert m1.shape == r1.shape and m2.shape == r2.shape
    assert jnp.allclose(m1, r1, atol=1e-4, rtol=1e-4)
    assert jnp.allclose(m2, r2, atol=1e-4, rtol=1e-4)
    print("KERNEL_OK")
</pallas_src>

<mosaic_0001>
module attributes {stable_mosaic.version = 11 : i64} {
  func.func @_local_inference_kernel(%arg0: i32, %arg1: memref<2xi32, #tpu.memory_space<smem>>, %arg2: memref<2xi32, #tpu.memory_space<smem>>, %arg3: memref<1x8x128xf32, #tpu.memory_space<vmem>>, %arg4: memref<1x16x128xf32, #tpu.memory_space<vmem>>, %arg5: memref<1x8x512xf32, #tpu.memory_space<vmem>>, %arg6: memref<1x16x512xf32, #tpu.memory_space<vmem>>) attributes {dimension_semantics = [#tpu.dimension_semantics<parallel>], iteration_bounds = array<i64: 2>, scalar_prefetch = 2 : i64, scratch_operands = 0 : i64, tpu.core_type = #tpu.core_type<tc>, window_params = [{transform_indices = @transform_0, window_bounds = array<i64: 1, 8, 128>}, {transform_indices = @transform_1, window_bounds = array<i64: 1, 16, 128>}, {transform_indices = @transform_2, window_bounds = array<i64: 1, 8, 512>}, {transform_indices = @transform_3, window_bounds = array<i64: 1, 16, 512>}]} {
    %0 = arith.index_cast %arg0 : i32 to index
    %1 = memref.load %arg1[%0] : memref<2xi32, #tpu.memory_space<smem>>
    %2 = arith.index_cast %arg0 : i32 to index
    %3 = memref.load %arg2[%2] : memref<2xi32, #tpu.memory_space<smem>>
    %c0 = arith.constant 0 : index
    %c0_0 = arith.constant 0 : index
    %c0_1 = arith.constant 0 : index
    %4 = vector.load %arg3[%c0, %c0_0, %c0_1] : memref<1x8x128xf32, #tpu.memory_space<vmem>>, vector<1x8x128xf32>
    %5 = vector.shape_cast %4 : vector<1x8x128xf32> to vector<8x128xf32>
    %c0_2 = arith.constant 0 : index
    %c0_3 = arith.constant 0 : index
    %c0_4 = arith.constant 0 : index
    %6 = vector.load %arg4[%c0_2, %c0_3, %c0_4] : memref<1x16x128xf32, #tpu.memory_space<vmem>>, vector<1x16x128xf32>
    %7 = vector.shape_cast %6 : vector<1x16x128xf32> to vector<16x128xf32>
    %cst = arith.constant dense<0.000000e+00> : vector<8x16xf32>
    %8 = tpu.matmul %5, %7, %cst {dimension_numbers = #tpu.dot_dimension_numbers<[1], [1], [0], [0], [0, 0, 1, 0], [], []>} : vector<8x128xf32>, vector<16x128xf32>, vector<8x16xf32> -> vector<8x16xf32>
    %cst_5 = arith.constant dense<0.000000e+00> : vector<16x8xf32>
    %9 = tpu.matmul %7, %5, %cst_5 {dimension_numbers = #tpu.dot_dimension_numbers<[1], [1], [0], [0], [0, 0, 1, 0], [], []>} : vector<16x128xf32>, vector<8x128xf32>, vector<16x8xf32> -> vector<16x8xf32>
    %10 = tpu.iota {dimensions = array<i32: 1>} : vector<8x16xi32>
    %11 = vector.broadcast %3 : i32 to vector<8x16xi32>
    %12 = arith.cmpi sge, %10, %11 : vector<8x16xi32>
    %cst_6 = arith.constant -1.000000e+30 : f32
    %13 = vector.broadcast %cst_6 : f32 to vector<8x16xf32>
    %14 = arith.select %12, %13, %8 : vector<8x16xi1>, vector<8x16xf32>
    %cst_7 = arith.constant dense<0xFF800000> : vector<8xf32>
    %15 = vector.multi_reduction <maximumf>, %14, %cst_7 [1] : vector<8x16xf32> to vector<8xf32>
    %16 = vector.shape_cast %15 : vector<8xf32> to vector<8x1xf32>
    %17 = vector.broadcast %16 : vector<8x1xf32> to vector<8x16xf32>
    %18 = arith.subf %14, %17 : vector<8x16xf32>
    %19 = math.exp %18 : vector<8x16xf32>
    %cst_8 = arith.constant dense<0.000000e+00> : vector<8xf32>
    %20 = vector.multi_reduction <add>, %19, %cst_8 [1] : vector<8x16xf32> to vector<8xf32>
    %21 = vector.shape_cast %20 : vector<8xf32> to vector<8x1xf32>
    %22 = tpu.reciprocal %21 : vector<8x1xf32> -> vector<8x1xf32>
    %cst_9 = arith.constant dense<0.000000e+00> : vector<8x128xf32>
    %23 = tpu.matmul %19, %7, %cst_9 {dimension_numbers = #tpu.dot_dimension_numbers<[1], [0], [0], [1], [0, 0, 1, 1], [], []>} : vector<8x16xf32>, vector<16x128xf32>, vector<8x128xf32> -> vector<8x128xf32>
    %24 = vector.broadcast %22 : vector<8x1xf32> to vector<8x128xf32>
    %25 = arith.mulf %23, %24 : vector<8x128xf32>
    %26 = tpu.iota {dimensions = array<i32: 1>} : vector<16x8xi32>
    %27 = vector.broadcast %1 : i32 to vector<16x8xi32>
    %28 = arith.cmpi sge, %26, %27 : vector<16x8xi32>
    %cst_10 = arith.constant -1.000000e+30 : f32
    %29 = vector.broadcast %cst_10 : f32 to vector<16x8xf32>
    %30 = arith.select %28, %29, %9 : vector<16x8xi1>, vector<16x8xf32>
    %cst_11 = arith.constant dense<0xFF800000> : vector<16xf32>
    %31 = vector.multi_reduction <maximumf>, %30, %cst_11 [1] : vector<16x8xf32> to vector<16xf32>
    %32 = vector.shape_cast %31 : vector<16xf32> to vector<16x1xf32>
    %33 = vector.broadcast %32 : vector<16x1xf32> to vector<16x8xf32>
    %34 = arith.subf %30, %33 : vector<16x8xf32>
    %35 = math.exp %34 : vector<16x8xf32>
    %cst_12 = arith.constant dense<0.000000e+00> : vector<16xf32>
    %36 = vector.multi_reduction <add>, %35, %cst_12 [1] : vector<16x8xf32> to vector<16xf32>
    %37 = vector.shape_cast %36 : vector<16xf32> to vector<16x1xf32>
    %38 = tpu.reciprocal %37 : vector<16x1xf32> -> vector<16x1xf32>
    %cst_13 = arith.constant dense<0.000000e+00> : vector<16x128xf32>
    %39 = tpu.matmul %35, %5, %cst_13 {dimension_numbers = #tpu.dot_dimension_numbers<[1], [0], [0], [1], [0, 0, 1, 1], [], []>} : vector<16x8xf32>, vector<8x128xf32>, vector<16x128xf32> -> vector<16x128xf32>
    %40 = vector.broadcast %38 : vector<16x1xf32> to vector<16x128xf32>
    %41 = arith.mulf %39, %40 : vector<16x128xf32>
    %c0_14 = arith.constant 0 : index
    %c0_15 = arith.constant 0 : index
    %c0_16 = arith.constant 0 : index
    %42 = vector.load %arg5[%c0_14, %c0_15, %c0_16] : memref<1x8x512xf32, #tpu.memory_space<vmem>>, vector<1x8x128xf32>
    %43 = vector.shape_cast %42 : vector<1x8x128xf32> to vector<8x128xf32>
    %44 = vector.shape_cast %5 : vector<8x128xf32> to vector<1x8x128xf32>
    tpu.vector_store %arg5[%c0_14, %c0_15, %c0_16], %44 {strides = array<i32>} : memref<1x8x512xf32, #tpu.memory_space<vmem>>, vector<1x8x128xf32>,
    %c0_17 = arith.constant 0 : index
    %c0_18 = arith.constant 0 : index
    %c128 = arith.constant 128 : index
    %45 = vector.load %arg5[%c0_17, %c0_18, %c128] : memref<1x8x512xf32, #tpu.memory_space<vmem>>, vector<1x8x128xf32>
    %46 = vector.shape_cast %45 : vector<1x8x128xf32> to vector<8x128xf32>
    %47 = vector.shape_cast %25 : vector<8x128xf32> to vector<1x8x128xf32>
    tpu.vector_store %arg5[%c0_17, %c0_18, %c128], %47 {strides = array<i32>} : memref<1x8x512xf32, #tpu.memory_space<vmem>>, vector<1x8x128xf32>,
    %48 = arith.subf %5, %25 : vector<8x128xf32>
    %c0_19 = arith.constant 0 : index
    %c0_20 = arith.constant 0 : index
    %c256 = arith.constant 256 : index
    %49 = vector.load %arg5[%c0_19, %c0_20, %c256] : memref<1x8x512xf32, #tpu.memory_space<vmem>>, vector<1x8x128xf32>
    %50 = vector.shape_cast %49 : vector<1x8x128xf32> to vector<8x128xf32>
    %51 = vector.shape_cast %48 : vector<8x128xf32> to vector<1x8x128xf32>
    tpu.vector_store %arg5[%c0_19, %c0_20, %c256], %51 {strides = array<i32>} : memref<1x8x512xf32, #tpu.memory_space<vmem>>, vector<1x8x128xf32>,
    %52 = arith.mulf %5, %25 : vector<8x128xf32>
    %c0_21 = arith.constant 0 : index
    %c0_22 = arith.constant 0 : index
    %c384 = arith.constant 384 : index
    %53 = vector.load %arg5[%c0_21, %c0_22, %c384] : memref<1x8x512xf32, #tpu.memory_space<vmem>>, vector<1x8x128xf32>
    %54 = vector.shape_cast %53 : vector<1x8x128xf32> to vector<8x128xf32>
    %55 = vector.shape_cast %52 : vector<8x128xf32> to vector<1x8x128xf32>
    tpu.vector_store %arg5[%c0_21, %c0_22, %c384], %55 {strides = array<i32>} : memref<1x8x512xf32, #tpu.memory_space<vmem>>, vector<1x8x128xf32>,
    %c0_23 = arith.constant 0 : index
    %c0_24 = arith.constant 0 : index
    %c0_25 = arith.constant 0 : index
    %56 = vector.load %arg6[%c0_23, %c0_24, %c0_25] : memref<1x16x512xf32, #tpu.memory_space<vmem>>, vector<1x16x128xf32>
    %57 = vector.shape_cast %56 : vector<1x16x128xf32> to vector<16x128xf32>
    %58 = vector.shape_cast %7 : vector<16x128xf32> to vector<1x16x128xf32>
    tpu.vector_store %arg6[%c0_23, %c0_24, %c0_25], %58 {strides = array<i32>} : memref<1x16x512xf32, #tpu.memory_space<vmem>>, vector<1x16x128xf32>,
    %c0_26 = arith.constant 0 : index
    %c0_27 = arith.constant 0 : index
    %c128_28 = arith.constant 128 : index
    %59 = vector.load %arg6[%c0_26, %c0_27, %c128_28] : memref<1x16x512xf32, #tpu.memory_space<vmem>>, vector<1x16x128xf32>
    %60 = vector.shape_cast %59 : vector<1x16x128xf32> to vector<16x128xf32>
    %61 = vector.shape_cast %41 : vector<16x128xf32> to vector<1x16x128xf32>
    tpu.vector_store %arg6[%c0_26, %c0_27, %c128_28], %61 {strides = array<i32>} : memref<1x16x512xf32, #tpu.memory_space<vmem>>, vector<1x16x128xf32>,
    %62 = arith.subf %7, %41 : vector<16x128xf32>
    %c0_29 = arith.constant 0 : index
    %c0_30 = arith.constant 0 : index
    %c256_31 = arith.constant 256 : index
    %63 = vector.load %arg6[%c0_29, %c0_30, %c256_31] : memref<1x16x512xf32, #tpu.memory_space<vmem>>, vector<1x16x128xf32>
    %64 = vector.shape_cast %63 : vector<1x16x128xf32> to vector<16x128xf32>
    %65 = vector.shape_cast %62 : vector<16x128xf32> to vector<1x16x128xf32>
    tpu.vector_store %arg6[%c0_29, %c0_30, %c256_31], %65 {strides = array<i32>} : memref<1x16x512xf32, #tpu.memory_space<vmem>>, vector<1x16x128xf32>,
    %66 = arith.mulf %7, %41 : vector<16x128xf32>
    %c0_32 = arith.constant 0 : index
    %c0_33 = arith.constant 0 : index
    %c384_34 = arith.constant 384 : index
    %67 = vector.load %arg6[%c0_32, %c0_33, %c384_34] : memref<1x16x512xf32, #tpu.memory_space<vmem>>, vector<1x16x128xf32>
    %68 = vector.shape_cast %67 : vector<1x16x128xf32> to vector<16x128xf32>
    %69 = vector.shape_cast %66 : vector<16x128xf32> to vector<1x16x128xf32>
    tpu.vector_store %arg6[%c0_32, %c0_33, %c384_34], %69 {strides = array<i32>} : memref<1x16x512xf32, #tpu.memory_space<vmem>>, vector<1x16x128xf32>,
    return
  }
  func.func @transform_0(%arg0: i32, %arg1: memref<2xi32, #tpu.memory_space<smem>>, %arg2: memref<2xi32, #tpu.memory_space<smem>>) -> (i32, i32, i32) {
    %c0_i32 = arith.constant 0 : i32
    %c0_i32_0 = arith.constant 0 : i32
    %c0_i32_1 = arith.constant 0 : i32
    return %arg0, %c0_i32, %c0_i32_0 : i32, i32, i32
  }
  func.func @transform_1(%arg0: i32, %arg1: memref<2xi32, #tpu.memory_space<smem>>, %arg2: memref<2xi32, #tpu.memory_space<smem>>) -> (i32, i32, i32) {
    %c0_i32 = arith.constant 0 : i32
    %c0_i32_0 = arith.constant 0 : i32
    %c0_i32_1 = arith.constant 0 : i32
    return %arg0, %c0_i32, %c0_i32_0 : i32, i32, i32
  }
  func.func @transform_2(%arg0: i32, %arg1: memref<2xi32, #tpu.memory_space<smem>>, %arg2: memref<2xi32, #tpu.memory_space<smem>>) -> (i32, i32, i32) {
    %c0_i32 = arith.constant 0 : i32
    %c0_i32_0 = arith.constant 0 : i32
    %c0_i32_1 = arith.constant 0 : i32
    return %arg0, %c0_i32, %c0_i32_0 : i32, i32, i32
  }
  func.func @transform_3(%arg0: i32, %arg1: memref<2xi32, #tpu.memory_space<smem>>, %arg2: memref<2xi32, #tpu.memory_space<smem>>) -> (i32, i32, i32) {
    %c0_i32 = arith.constant 0 : i32
    %c0_i32_0 = arith.constant 0 : i32
    %c0_i32_1 = arith.constant 0 : i32
    return %arg0, %c0_i32, %c0_i32_0 : i32, i32, i32
  }
}

</mosaic_0001>

<bundles_post_ra>
// kernel: tpu_custom_call.1
= control target key start
LH: loop header
LB: loop body
LE: loop exit
PB: predicated region body
PF: predicated region fallthrough
CT: control target
= control target key end

     0   :  { %s1467_s0 = inlined_call_operand.hbm [shape: s32[2], index: 0, kind: input, shape index: {}]   ;;  %s1468_s2 = inlined_call_operand.hbm [shape: f32[2,8,128], index: 2, kind: input, shape index: {}]   ;;  %s1469_s3 = inlined_call_operand.hbm [shape: f32[2,16,128], index: 3, kind: input, shape index: {}]   ;;  %s1470_s4 = inlined_call_operand.hbm [shape: f32[2,8,512], index: 4, kind: output, shape index: {0}]   ;;  %s1471_s5 = inlined_call_operand.hbm [shape: f32[2,16,512], index: 5, kind: output, shape index: {1}]   ;;  %s1472_s1 = inlined_call_operand.vmem [shape: s32[2], index: 1, kind: input, shape index: {}]  }
   0x1   :  { %s920_s20 = scalar_lea.hbm %s1467_s0, 16 }
   0x2   :  { %p921_p0 = scmp.ne.s32.totalorder %s1467_s0, %s920_s20  ;;  %p924_p1 = scmp.lt.u32.totalorder %s920_s20, %s1467_s0 }
   0x4   :  { %p926_p2 = pnand %p924_p1, %p921_p0 }
   0x6   :  { %929 = shalt.err (!%p926_p2)  }
   0x7   :  { %s1108_s25 = smov [#allocation3]   ;;  %s13_s30 = sshll.u32 %s1472_s1, 4  ;;  %s14_s30 = int_to_ptr.vmem [resolvable:$true] %s13_s30 }
   0x8   :  { %12 = dma.hbm_to_smem %s1467_s0, 16, %s1108_s25, [#allocation2] }
   0x9   :  { %s930_s6 = scalar_lea.vmem %s14_s30, 16  ;;  %p935_p4 = scmp.lt.s32.totalorder %s14_s30, %s14_s30 }
   0xa   :  { %p931_p3 = scmp.ne.s32.totalorder %s14_s30, %s930_s6  ;;  %p936_p5 = scmp.lt.s32.totalorder %s930_s6, %s930_s6 }
   0xc   :  { %p937_p6 = por %p936_p5, %p935_p4 }
   0xe   :  { %p938_p7 = pnand %p937_p6, %p931_p3 }
  0x10   :  { %941 = shalt.err (!%p938_p7)  }
  0x11   :  { %s1109_s7 = smov [#allocation4]  }
  0x12   :  { %16 = dma.vmem_to_smem %s14_s30, 16, %s1109_s7, [#allocation2] }
  0x13   :  { %1074 = dma.done.wait [#allocation2], 32 }
  0x14   :  { %1075 = vsyncadd [#allocation2], 4294967264 }
  0x15   :  { %18 = sfence }
  0x16   :  { %19 = vsyncpa [#allocation6], 0 }
  0x17   :  { %21 = vsyncpa [#allocation6 + $0x1], 0 }
  0x18   :  { %22 = vsyncpa [#allocation9], 0 }
  0x19   :  { %24 = vsyncpa [#allocation9 + $0x1], 0 }
  0x1a   :  { %25 = vsyncpa [#allocation7], 0 }
  0x1b   :  { %27 = vsyncpa [#allocation7 + $0x1], 0 }
  0x1c   :  { %28 = vsyncpa [#allocation12], 0 }
  0x1d   :  { %30 = vsyncpa [#allocation12 + $0x1], 0  ;;  %s1166_s0 = smov 0   ;;  %s1168_s1 = smov 0  }
  0x1e   :  { %s1170_s8 = smov 0   ;;  %s1172_s9 = smov 0  }
  0x1f LB: > { %s1187_s10 = sadd.s32 4294967295, %s1106_s9   ;;  %s774_s11 = sadd.s32 4294967294, %s1106_s9   ;;  %s1106_s9 = sphi %s1172_s9, %s1490_s9   ;;  %s1102_s8 = sphi %s1170_s8, %s1489_s8   ;;  %s1098_s1 = sphi %s1168_s1, %s1488_s1   ;;  %s1094_s0 = sphi %s1166_s0, %s1487_s0  }
  0x20   : > { %s1191_s12 = sadd.s32 1, %s1106_s9   ;;  %s43_s13 = sadd.s32 1, %s1102_s8 }
  0x21   : > { %s40_s14 = ssub.s32 %s1106_s9, %s1191_s12  ;;  %p50_p8 = scmp.ne.s32.totalorder %s1102_s8, %s1098_s1 }
  0x22   : > { %p41_p9 = scmp.eq.s32.totalorder %s40_s14, 0  ;;  %p51_p10 = scmp.eq.s32.totalorder %s1106_s9, 0 }
  0x23   : > { %p56_p11 = scmp.ne.s32.totalorder %s1098_s1, %s1094_s0  ;;  %p57_p12 = scmp.eq.s32.totalorder %s1187_s10, 0 }
  0x24   : > { %s1203_s15 = scalar_select %p41_p9, %s1102_s8, %s43_s13  }
  0x25   : > { %p1205_p13 = por %p51_p10, %p50_p8  ;;  %p1209_p0 = por %p57_p12, %p56_p11 }
  0x26   : > { %p106_p1 = scmp.eq.s32.totalorder %s1187_s10, 1  ;;  %p112_p2 = scmp.eq.s32.totalorder %s774_s11, 1 }
  0x27   : > { %s1476_s17 = scalar_select %p1209_p0, 1, 0 }
  0x28   : > { %p865_p4 = scmp.lt.s32.totalorder %s1106_s9, 2  ;;  %p1216_p5 = por %p106_p1, %p50_p8 }
  0x29   : > { %p1220_p6 = por %p112_p2, %p56_p11  ;;  %s1225_s20 = sand.u32 1, %s1102_s8  }
  0x2a   : > { %s1477_s18 = scalar_select %p1216_p5, 1, 0 }
  0x2b   : > { %s1478_s19 = scalar_select %p1220_p6, 1, 0 }
  0x2c   : > { %s778_s21 = sshll.u32 %s1106_s9, 7  ;;  %s777_s22 = sshll.u32 %s1225_s20, 3 }
  0x2d   : > { %s1232_s25 = scalar_lea.hbm %s1468_s2, %s778_s21  ;;  %s162_s26 = scalar_lea.vmem [#allocation5], %s777_s22 }
  0x2e   : > { %s169_s27 = sshll.u32 %s162_s26, 4  ;;  %p1236_p7 = pnand %p865_p4, %p1205_p13  ;;  %s1240_s27 = int_to_ptr.vmem [resolvable:$true] %s169_s27 }
  0x2f   : > { %s159_s29 = scalar_lea.sflag [#allocation6], %s1225_s20  ;;  %s942_s30 = scalar_lea.hbm %s1232_s25, 128 }
  0x30   : > { %p943_p10 = scmp.ne.s32.totalorder %s1232_s25, %s942_s30  ;;  %p944_p11 = pneg %p1236_p7 }
  0x31   : > { %s947_s11 = scalar_lea.hbm %s1468_s2, 256  ;;  %p948_p13 = scmp.lt.u32.totalorder %s1232_s25, %s1468_s2 }
  0x32   : > { %p945_p12 = pnand %p944_p11, %p943_p10  ;;  %p949_p2 = scmp.lt.u32.totalorder %s947_s11, %s942_s30 }
  0x33   : > { %p951_p3 = scmp.lt.u32.totalorder %s942_s30, %s1232_s25 }
  0x34   : > { %p946_p1 = pneg %p945_p12  ;;  %p950_p4 = por %p949_p2, %p948_p13 }
  0x36   : > { %p952_p8 = por %p951_p3, %p950_p4 }
  0x38   : > { %p953_p9 = pnand %p952_p8, %p946_p1 }
  0x3a   : > { %956 = shalt.err (!%p953_p9)
}
  0x3b   : > { %s957_s16 = scalar_lea.vmem %s1240_s27, 128  ;;  %s1110_s21 = smov [#allocation5]  }
  0x3c   : > { %p958_p10 = scmp.ne.s32.totalorder %s1240_s27, %s957_s16  ;;  %s962_s22 = sshll.u32 %s1110_s21, 4  ;;  %s963_s22 = int_to_ptr.vmem [resolvable:$false] %s962_s22 }
  0x3d   : > { %s964_s23 = scalar_lea.vmem %s963_s22, 256  ;;  %p965_p5 = scmp.lt.s32.totalorder %s1240_s27, %s963_s22 }
  0x3e   : > { %p960_p12 = pnand %p958_p10, %p944_p11  ;;  %p966_p13 = scmp.lt.s32.totalorder %s964_s23, %s957_s16 }
  0x40   : > { %p961_p6 = pneg %p960_p12  ;;  %p967_p2 = por %p966_p13, %p965_p5 }
  0x42   : > { %p968_p3 = pnand %p967_p2, %p961_p6 }
  0x44   : > { %971 = shalt.err (!%p968_p3)
}
  0x45   : > { %854 = dma.hbm_to_vmem [thread:$0]  (!%p1236_p7), %s1232_s25, 128, %s1240_s27, %s159_s29  }
  0x46   : > { %p1480_p8 = scmp.lt.s32.totalorder %s1106_s9, 3  ;;  %p1481_p9 = scmp.ge.s32.totalorder %s1106_s9, 1 }
  0x47   : > { %s779_s26 = sshll.u32 %s1225_s20, 4  ;;  %s798_s30 = sshll.u32 %s1106_s9, 8 }
  0x48   : > { %p1274_p1 = pnand %p1481_p9, %p1480_p8  ;;  %s1283_s11 = scalar_lea.hbm %s1469_s3, %s798_s30 }
  0x49   : > { %s180_s13 = scalar_lea.vmem [#allocation8], %s779_s26  ;;  %s177_s25 = scalar_lea.sflag [#allocation9], %s1225_s20 }
  0x4a   : > { %s187_s14 = sshll.u32 %s180_s13, 4  ;;  %s972_s27 = scalar_lea.hbm %s1283_s11, 256  ;;  %s1285_s14 = int_to_ptr.vmem [resolvable:$true] %s187_s14 }
  0x4b   : > { %p973_p5 = scmp.ne.s32.totalorder %s1283_s11, %s972_s27  ;;  %s977_s21 = scalar_lea.hbm %s1469_s3, 512 }
  0x4c   : > { %p978_p10 = scmp.lt.u32.totalorder %s1283_s11, %s1469_s3  ;;  %p979_p12 = scmp.lt.u32.totalorder %s977_s21, %s972_s27 }
  0x4d   : > { %p975_p6 = pnand %p973_p5, %p944_p11  ;;  %p981_p2 = scmp.lt.u32.totalorder %s972_s27, %s1283_s11 }
  0x4e   : > { %p980_p13 = por %p979_p12, %p978_p10 }
  0x4f   : > { %p976_p4 = pneg %p975_p6 }
  0x50   : > { %p982_p3 = por %p981_p2, %p980_p13 }
  0x52   : > { %p983_p8 = pnand %p982_p3, %p976_p4 }
  0x54   : > { %986 = shalt.err (!%p983_p8)
}
  0x55   : > { %s987_s26 = scalar_lea.vmem %s1285_s14, 256  ;;  %s1111_s30 = smov [#allocation8]  }
  0x56   : > { %p988_p9 = scmp.ne.s32.totalorder %s1285_s14, %s987_s26  ;;  %s992_s6 = sshll.u32 %s1111_s30, 4  ;;  %s993_s6 = int_to_ptr.vmem [resolvable:$false] %s992_s6 }
  0x57   : > { %s994_s7 = scalar_lea.vmem %s993_s6, 512  ;;  %p995_p0 = scmp.lt.s32.totalorder %s1285_s14, %s993_s6 }
  0x58   : > { %p990_p5 = pnand %p988_p9, %p944_p11  ;;  %p996_p10 = scmp.lt.s32.totalorder %s994_s7, %s987_s26 }
  0x5a   : > { %p991_p6 = pneg %p990_p5  ;;  %p997_p12 = por %p996_p10, %p995_p0 }
  0x5c   : > { %p998_p13 = pnand %p997_p12, %p991_p6 }
  0x5e   : > { %1001 = shalt.err (!%p998_p13)
}
  0x5f   : > { %s1112_s13 = smov 128   ;;  %s1113_s27 = smov 8  }
  0x60   : > { %857 = dma.hbm_to_vmem [thread:$0]  (!%p1236_p7), %s1283_s11, 256, %s1285_s14, %s177_s25, %s1112_s13, %s1112_s13, %s1113_s27  }
  0x61   : > { %199 = sbr.rel (%p1274_p1) target bundleno = 746 (0x2ea), region = 28  ;;  %s1316_s29 = sand.u32 (!%p1274_p1), 1, %s1098_s1  }
  0x62   : > { %s783_s16 = sshll.u32 (!%p1274_p1), %s1316_s29, 3  ;;  %s202_s21 = scalar_lea.sflag (!%p1274_p1), [#allocation6], %s1316_s29 }
  0x63   : > { %s205_s22 = scalar_lea.vmem (!%p1274_p1), [#allocation5], %s783_s16  ;;  %p1483_p0 = scmp.ne.s32.totalorder (!%p1274_p1), %s1476_s17, 0 }
  0x68   : > { %1077 = dma.done.wait (%p1483_p0), %s202_s21, 128  }
  0x69   : > { %1079 = vsyncadd (%p1483_p0), %s202_s21, 4294967168  ;;  %s784_s20 = sshll.u32 %s1316_s29, 4  ;;  %s211_s28 = scalar_lea.sflag [#allocation9], %s1316_s29 }
  0x6a   : > { %s214_s24 = scalar_lea.vmem [#allocation8], %s784_s20 }
  0x6b   : > { %1081 = dma.done.wait (%p1483_p0), %s211_s28, 256  }
  0x6c   : > { %1083 = vsyncadd (%p1483_p0), %s211_s28, 4294967040  ;;  %v1114_v0 = vmov 0.0|0.0   ;;  %vm1115_vm0 = vmmov 0   ;;  %v1116_v1 = vmov 0.0   ;;  %s786_s11 = sshll.u32 %s1316_s29, 6  ;;  %v1332_v2 = vld [vmem:[%s205_s22] sm:$0xff]  ;;  %v397_v6 = vlaneseq }
  0x6d   : > { %837 = vmatprep.subr.bf16.mxu0 %v1114_v0  ;;  %817 = vmatprep.mubr.msk.f32.mxu0 %vm1115_vm0, %v1116_v1  ;;  %v1334_v3 = vld [vmem:[%s214_s24] sm:$0xff]  ;;  %v1336_v4 = vld [vmem:[%s214_s24 + $0x8] sm:$0xff]  ;;  %s1341_s17 = scalar_lea.vmem [#allocation11], %s786_s11  ;;  %s247_s14 = sld [smem:[#allocation3 + %s1187_s10]]  ;;  %vm491_vm2 = vcmask 64512   ;;  %vm402_vm4 = vcmask 130048  }
  0x6e   : > { %820 = vmatprep.subr.mxu1 %v1332_v2  ;;  %v838_v5 = vpack.c.bf16 %v1336_v4, %v1334_v3  ;;  %601 = vst [vmem:[%s1341_s17] sm:$0xff] %v1334_v3  ;;  %602 = vst [vmem:[%s1341_s17 + $0x20] sm:$0xff] %v1336_v4  ;;  %822 = vmatprep.mubr.f32.mxu1 %v1334_v3  ;;  %s248_s25 = sld [smem:[#allocation4 + %s1187_s10]]  ;;  %v398_v7 = vand.u32 127, %v397_v6  ;;  %s785_s23 = sshll.u32 %s1316_s29, 5 }
  0x6f   : > { %821 = vmatpush3.xpose.msra.mxu1 %v1332_v2  ;;  %s1366_s26 = scalar_lea.vmem [#allocation10], %s785_s23  ;;  %s799_s30 = sshll.u32 %s1187_s10, 9 }
  0x70   : > { %839 = vmatpush3.bf16.xpose.msra.mxu0 %v838_v5  ;;  %840 = vmatprep.subr.bf16.mxu1 %v1114_v0  ;;  %595 = vst [vmem:[%s1366_s26] sm:$0xff] %v1332_v2  ;;  %s633_s6 = sshll.u32 %s1366_s26, 4  ;;  %s800_s7 = sshll.u32 %s1187_s10, 10  ;;  %s1382_s6 = int_to_ptr.vmem [resolvable:$true] %s633_s6 }
  0x71   : > { %832 = vmatprep.subr.mxu0 %v1332_v2  ;;  %s646_s13 = sshll.u32 %s1341_s17, 4  ;;  %s1377_s21 = scalar_lea.hbm %s1470_s4, %s799_s30  ;;  %s1392_s13 = int_to_ptr.vmem [resolvable:$true] %s646_s13 }
  0x72   : > { %823 = vmatmul.mubr.f32.vlgmr.msra.gmra.mrb[0].mxu1 %v1336_v4  ;;  %s1390_s20 = scalar_lea.hbm %s1471_s5, %s800_s7  ;;  %s614_s28 = scalar_lea.sflag [#allocation7], %s1316_s29 }
  0x73   : > { %842 = vmatpush3.bf16.msra.mxu1 %v838_v5  ;;  %829 = vmatprep.mubr.msk.f32.mxu1 %vm1115_vm0, %v1116_v1  ;;  %v487_v8 = vstv %s247_s14  ;;  %s1002_s24 = scalar_lea.vmem %s1382_s6, 512  ;;  %p1484_p11 = scmp.ne.s32.totalorder %s1477_s18, 0 }
  0x74   : > { %vm488_vm1 = vcmp.ge.s32.totalorder %v398_v7, %v487_v8  ;;  %v399_v10 = vstv %s248_s25  ;;  %p1003_p7 = scmp.ne.s32.totalorder %s1382_s6, %s1002_s24  ;;  %s1117_s11 = smov [#allocation10]  }
  0x75   : > { %vm400_vm3 = vcmp.ge.s32.totalorder %v398_v7, %v399_v10  ;;  %s1006_s14 = sshll.u32 %s1117_s11, 4  ;;  %s1007_s14 = int_to_ptr.vmem [resolvable:$false] %s1006_s14 }
  0x76   : > { %p1004_p1 = pnand %p1003_p7, %p1484_p11  ;;  %s1008_s25 = scalar_lea.vmem %s1007_s14, 1024 }
  0x77   : > { %818 = vmatmul.mubr.f32.vlgmr.msra.gmra.mrb[0].mxu0 %v1332_v2  ;;  %p1009_p2 = scmp.lt.s32.totalorder %s1382_s6, %s1007_s14  ;;  %p1010_p3 = scmp.lt.s32.totalorder %s1008_s25, %s1002_s24 }
  0x78   : > { %833 = vmatpush3.msra.mxu0 %v1332_v2  ;;  %p1005_p4 = pneg %p1004_p1 }
  0x79   : > { %p1011_p8 = por %p1010_p3, %p1009_p2 }
  0x7b   : > { %p1012_p9 = pnand %p1011_p8, %p1005_p4 }
 0x145   : > { %v824_v9 = vpop.f32.mrb[0].mxu1 }
 0x146   : > { %v388_v11 = vpop.f32.mrb[1].mxu1  ;;  %v490_v14 = vsel %vm488_vm1, -1e+30, %v824_v9 }
 0x147   : > { %v489_v12 = vsel %vm488_vm1, -1e+30, %v388_v11  ;;  %v495_v19 = vsel %vm491_vm2, %v490_v14, -inf }
 0x148   : > { %v492_v13 = vsel %vm491_vm2, %v489_v12, -inf }
 0x149   : > { %493 = vmax.xlane.f32.xlu0 %v492_v13 }
 0x14a   : > { %v318_v15 = vpop.f32.mrb[0].mxu0 }
 0x14b   : > { %v401_v16 = vsel %vm400_vm3, -1e+30, %v318_v15  ;;  %v819_v17 = vpop.f32.mrb[1].mxu0 }
 0x14c   : > { %v403_v18 = vsel %vm402_vm4, %v401_v16, -inf }
 0x14d   : > { %404 = vmax.xlane.f32.xlu1 %v403_v18  ;;  %496 = vmax.xlane.f32.xlu0 %v495_v19 }
 0x1d6   : > { %v494_v20 = vpop.xlane.xlu0 %493 }
 0x1d7   : > { %v498_v21 = vsub.f32 %v489_v12, %v494_v20 }
 0x1d9   : > { %v500_v22 = vmul.f32 1.442695, %v498_v21 }
 0x1da   : > { %v405_v23 = vpop.xlane.xlu1 %404  ;;  %v497_v24 = vpop.xlane.xlu0 %496 }
 0x1db   : > { %908 = vpow2.f32 %v500_v22  ;;  %v406_v25 = vsub.f32 %v401_v16, %v405_v23  ;;  %v499_v26 = vsub.f32 %v490_v14, %v497_v24 }
 0x1dd   : > { %v407_v27 = vmul.f32 1.442695, %v406_v25  ;;  %v502_v28 = vmul.f32 1.442695, %v499_v26 }
 0x1df   : > { %910 = vpow2.f32 %v407_v27 }
 0x1e0   : > { %912 = vpow2.f32 %v502_v28 }
 0x1e5   : > { %v909_v29 = vpop.eup %908 }
 0x1e6   : > { %834 = vmatprep.mubr.msk.f32.mxu0 %vm491_vm2, %v909_v29  ;;  %v504_v30 = vsel %vm491_vm2, %v909_v29, 0.0 }
 0x1e7   : > { %505 = vadd.xlane.f32.xlu0 %v504_v30 }
 0x1e9   : > { %v911_v31 = vpop.eup %910 }
 0x1ea   : > { %v913_v32 = vpop.eup %912  ;;  %830 = vmatmul.mubr.msk.f32.vlgmr.msra.gmra.mrb[2].mxu1 %vm402_vm4, %v911_v31  ;;  %v409_v33 = vsel %vm402_vm4, %v911_v31, 0.0 }
 0x1eb   : > { %835 = vmatmul.mubr.msk.f32.vlgmr.msra.gmra.mrb[2].mxu0 %vm491_vm2, %v913_v32  ;;  %410 = vadd.xlane.f32.xlu1 %v409_v33  ;;  %v507_v34 = vsel %vm491_vm2, %v913_v32, 0.0 }
 0x1ef   : > { %508 = vadd.xlane.f32.xlu1 %v507_v34 }
 0x274   : > { %v506_v37 = vpop.xlane.xlu0 %505 }
 0x278   : > { %v411_v35 = vpop.xlane.xlu1 %410 }
 0x279   : > { %914 = vrcp.f32 %v411_v35 }
 0x27c   : > { %v509_v36 = vpop.xlane.xlu1 %508 }
 0x27d   : > { %916 = vrcp.f32 %v509_v36 }
 0x27e   : > { %918 = vrcp.f32 %v506_v37 }
 0x283   : > { %v915_v38 = vpop.eup %914 }
 0x287   : > { %v917_v40 = vpop.eup %916 }
 0x288   : > { %v919_v44 = vpop.eup %918 }
 0x2bd   : > { %v482_v39 = vpop.f32.mrb[2].mxu1 }
 0x2be   : > { %v486_v41 = vmul.f32 %v915_v38, %v482_v39  ;;  %v836_v42 = vpop.f32.mrb[2].mxu0  ;;  %v831_v43 = vpop.f32.mrb[3].mxu1 }
 0x2bf   : > { %v594_v45 = vmul.f32 %v917_v40, %v836_v42  ;;  %v584_v46 = vpop.f32.mrb[3].mxu0 }
 0x2c0   : > { %596 = vst [vmem:[%s1366_s26 + $0x8] sm:$0xff] %v486_v41  ;;  %v597_v47 = vsub.f32 %v1332_v2, %v486_v41  ;;  %v599_v48 = vmul.f32 %v486_v41, %v1332_v2  ;;  %v593_v49 = vmul.f32 %v919_v44, %v584_v46 }
 0x2c1   : > { %604 = vst [vmem:[%s1341_s17 + $0x28] sm:$0xff] %v594_v45  ;;  %v606_v50 = vsub.f32 %v1336_v4, %v594_v45  ;;  %v610_v51 = vmul.f32 %v594_v45, %v1336_v4 }
 0x2c2   : > { %598 = vst [vmem:[%s1366_s26 + $0x10] sm:$0xff] %v597_v47  ;;  %600 = vst [vmem:[%s1366_s26 + $0x18] sm:$0xff] %v599_v48  ;;  %v605_v52 = vsub.f32 %v1334_v3, %v593_v49  ;;  %v609_v53 = vmul.f32 %v593_v49, %v1334_v3 }
 0x2c3   : > { %603 = vst [vmem:[%s1341_s17 + $0x8] sm:$0xff] %v593_v49  ;;  %608 = vst [vmem:[%s1341_s17 + $0x30] sm:$0xff] %v606_v50 }
 0x2c4   : > { %612 = vst [vmem:[%s1341_s17 + $0x38] sm:$0xff] %v610_v51 }
 0x2c5   : > { %1015 = shalt.err (!%p1012_p9)
}
 0x2c6   : > { %s1016_s23 = scalar_lea.hbm %s1377_s21, 512  ;;  %s1020_s7 = scalar_lea.hbm %s1470_s4, 1024 }
 0x2c7   : > { %p1017_p5 = scmp.ne.s32.totalorder %s1377_s21, %s1016_s23  ;;  %p1021_p12 = scmp.lt.u32.totalorder %s1377_s21, %s1470_s4 }
 0x2c8   : > { %p1022_p13 = scmp.lt.u32.totalorder %s1020_s7, %s1016_s23  ;;  %p1024_p7 = scmp.lt.u32.totalorder %s1016_s23, %s1377_s21 }
 0x2c9   : > { %p1018_p6 = pnand %p1017_p5, %p1484_p11 }
 0x2ca   : > { %p1023_p0 = por %p1022_p13, %p1021_p12 }
 0x2cb   : > { %p1019_p10 = pneg %p1018_p6 }
 0x2cc   : > { %p1025_p1 = por %p1024_p7, %p1023_p0 }
 0x2ce   : > { %p1026_p4 = pnand %p1025_p1, %p1019_p10 }
 0x2d0   : > { %1029 = shalt.err (!%p1026_p4)
}
 0x2d1   : > { %847 = dma.vmem_to_hbm [thread:$0]  (%p1484_p11), %s1382_s6, 512, %s1377_s21, %s614_s28   ;;  %607 = vst [vmem:[%s1341_s17 + $0x10] sm:$0xff] %v605_v52  ;;  %611 = vst [vmem:[%s1341_s17 + $0x18] sm:$0xff] %v609_v53 }
 0x2d2   : > { %s619_s10 = scalar_lea.sflag [#allocation12], %s1316_s29  ;;  %s1030_s22 = scalar_lea.vmem %s1392_s13, 1024 }
 0x2d3   : > { %p1031_p2 = scmp.ne.s32.totalorder %s1392_s13, %s1030_s22  ;;  %s1118_s24 = smov [#allocation11]  }
 0x2d4   : > { %s1034_s11 = sshll.u32 %s1118_s24, 4  ;;  %s1035_s11 = int_to_ptr.vmem [resolvable:$false] %s1034_s11 }
 0x2d5   : > { %p1032_p3 = pnand %p1031_p2, %p1484_p11  ;;  %s1036_s14 = scalar_lea.vmem %s1035_s11, 2048 }
 0x2d6   : > { %p1037_p9 = scmp.lt.s32.totalorder %s1392_s13, %s1035_s11  ;;  %p1038_p5 = scmp.lt.s32.totalorder %s1036_s14, %s1030_s22 }
 0x2d7   : > { %p1033_p8 = pneg %p1032_p3 }
 0x2d8   : > { %p1039_p6 = por %p1038_p5, %p1037_p9 }
 0x2da   : > { %p1040_p10 = pnand %p1039_p6, %p1033_p8 }
 0x2dc   : > { %1043 = shalt.err (!%p1040_p10)
}
 0x2dd   : > { %s1044_s17 = scalar_lea.hbm %s1390_s20, 1024  ;;  %s1048_s28 = scalar_lea.hbm %s1471_s5, 2048 }
 0x2de   : > { %p1045_p12 = scmp.ne.s32.totalorder %s1390_s20, %s1044_s17  ;;  %p1049_p7 = scmp.lt.u32.totalorder %s1390_s20, %s1471_s5 }
 0x2df   : > { %p1050_p1 = scmp.lt.u32.totalorder %s1048_s28, %s1044_s17  ;;  %p1052_p2 = scmp.lt.u32.totalorder %s1044_s17, %s1390_s20 }
 0x2e0   : > { %p1046_p13 = pnand %p1045_p12, %p1484_p11 }
 0x2e1   : > { %p1051_p4 = por %p1050_p1, %p1049_p7 }
 0x2e2   : > { %p1047_p0 = pneg %p1046_p13 }
 0x2e3   : > { %p1053_p3 = por %p1052_p2, %p1051_p4 }
 0x2e5   : > { %p1054_p8 = pnand %p1053_p3, %p1047_p0 }
 0x2e7   : > { %1057 = shalt.err (!%p1054_p8)
}
 0x2e8   : > { %s1119_s26 = smov 512   ;;  %s1120_s30 = smov 32  }
 0x2e9   : > { %848 = dma.vmem_to_hbm [thread:$0]  (%p1484_p11), %s1392_s13, 1024, %s1390_s20, %s619_s10, %s1119_s26, %s1119_s26, %s1120_s30  }
 0x2ea PF: > { %s661_s7 = sand.u32 1, %s1094_s0   ;;  %p1485_p9 = scmp.ne.s32.totalorder %s1478_s19, 0 }
 0x2eb   : > { %p1486_p5 = scmp.ge.s32.totalorder %s1106_s9, 2  ;;  %s662_s27 = scalar_lea.sflag [#allocation7], %s661_s7 }
 0x2ed   : > { %p859_p6 = pnand %p1486_p5, %p1485_p9 }
 0x2ef   : > { %1085 = dma.done.wait (!%p859_p6), %s662_s27, 512  }
 0x2f0   : > { %1087 = vsyncadd (!%p859_p6), %s662_s27, 4294966784  ;;  %s671_s16 = scalar_lea.sflag [#allocation12], %s661_s7 }
 0x2f1   : > { %1089 = dma.done.wait (!%p859_p6), %s671_s16, 1024  }
 0x2f2   : > { %1091 = vsyncadd (!%p859_p6), %s671_s16, 4294966272  ;;  %p33_p11 = scmp.ge.s32.totalorder %s1191_s12, 4   ;;  %s1487_s0 = smov %s1098_s1 }
 0x2f3   : > { %s1488_s1 = smov %s1102_s8  ;;  %s1489_s8 = smov %s1203_s15 }
 0x2f4   : > { %s1490_s9 = smov %s1191_s12  ;;  %35 = sbr.rel (!%p33_p11) target bundleno = 31 (0x1f), region = 103 }
 0x2fb   :  { %676 = vsyncpa [#allocation6], 1 }
 0x2fc   :  { %678 = vsyncpa [#allocation6 + $0x1], 1 }
 0x2fd   :  { %679 = vsyncpa [#allocation9], 1 }
 0x2fe   :  { %681 = vsyncpa [#allocation9 + $0x1], 1 }
 0x2ff   :  { %682 = vsyncpa [#allocation7], 1 }
 0x300   :  { %684 = vsyncpa [#allocation7 + $0x1], 1 }
 0x301   :  { %685 = vsyncpa [#allocation12], 1 }
 0x302   :  { %687 = vsyncpa [#allocation12 + $0x1], 1 }

</bundles_post_ra>
